<compile_context>
chip_gen: v5e
topology: v5e:2x2
jax: 0.10.0
libtpu: 0.0.40
codegen_flags: <defaults>
</compile_context>

<pallas_src>
from functools import lru_cache

import jax
import jax.numpy as jnp
from jax.experimental import pallas as pl
from jax.experimental.pallas import tpu as pltpu

H1 = 400
H2 = 300
ACTION_DIM = 3
STATE_DIM = 11

# Padded (lane friendly) output sizes — fixed by the module.
H1P = 512                     # round_up(400, 128)
H2P = 384                     # round_up(300, 128)
ADP = 128                     # round_up(3, 128)

MAX_TB = 512                  # batch tile cap (multiple of 128 on every gen)


def _round_up(x, m):
    return ((x + m - 1) // m) * m


# --------------------------------------------------------------------------
# Capability probe: single-buffered resident operands (pl.Buffered(1)).
# Runs once, eagerly, at import so a missing/rejecting API can never break a
# (possibly jitted) hot-path compile later.
# --------------------------------------------------------------------------
def _probe_single_buffering():
    try:
        def _copy(x_ref, o_ref):
            o_ref[...] = x_ref[...]

        f = pl.pallas_call(
            _copy,
            out_shape=jax.ShapeDtypeStruct((8, 128), jnp.float32),
            grid=(2,),
            in_specs=[pl.BlockSpec((8, 128), lambda i: (0, 0),
                                   pipeline_mode=pl.Buffered(1))],
            out_specs=pl.BlockSpec((8, 128), lambda i: (0, 0)),
        )
        jax.block_until_ready(f(jnp.zeros((8, 128), jnp.float32)))
        return True
    except Exception:
        return False


_SINGLE_BUFFER_WEIGHTS = _probe_single_buffering()


# --------------------------------------------------------------------------
# Kernel
# --------------------------------------------------------------------------
def actor_kernel(x_ref, w1_ref, b1_ref, w2_ref, b2_ref, w3_ref, b3_ref, o_ref):
    # layer 1: Linear + ReLU   (bf16 MXU operands, f32 accumulate, f32 VPU math)
    x = x_ref[...].astype(jnp.bfloat16)                       # (TB, 11)
    h = jnp.dot(x, w1_ref[...], preferred_element_type=jnp.float32)
    h = jnp.maximum(h + b1_ref[...], 0.0)
    # layer 2: Linear + ReLU
    h = jnp.dot(h.astype(jnp.bfloat16), w2_ref[...],
                preferred_element_type=jnp.float32)
    h = jnp.maximum(h + b2_ref[...], 0.0)
    # layer 3: Linear + tanh
    h = jnp.dot(h.astype(jnp.bfloat16), w3_ref[...],
                preferred_element_type=jnp.float32)
    o_ref[...] = jnp.tanh(h + b3_ref[...]).astype(o_ref.dtype)


# --------------------------------------------------------------------------
# Parameter preparation (pad + bf16-cast ONCE, outside the hot loop)
# --------------------------------------------------------------------------
def prepare_params(params):
    w1, b1, w2, b2, w3, b3 = params

    def pad_w(a, rows, cols):
        a = a.astype(jnp.float32)
        a = jnp.pad(a, ((0, rows - a.shape[0]), (0, cols - a.shape[1])))
        return a.astype(jnp.bfloat16)        # MXU-native; halves weight DMA

    def pad_b(a, cols):                      # biases stay f32 (added to f32 acc)
        a = a.reshape(1, -1).astype(jnp.float32)
        return jnp.pad(a, ((0, 0), (0, cols - a.shape[1])))

    w1_p = pad_w(w1, STATE_DIM, H1P)         # (11, 512)  — K left unpadded
    b1_p = pad_b(b1, H1P)
    w2_p = pad_w(w2, H1P, H2P)               # (512, 384)
    b2_p = pad_b(b2, H2P)
    w3_p = pad_w(w3, H2P, ADP)               # (384, 128)
    b3_p = pad_b(b3, ADP)
    return tuple(jax.device_put(a) for a in (w1_p, b1_p, w2_p, b2_p, w3_p, b3_p))


# --------------------------------------------------------------------------
# pallas_call builder (cached per shape so the callable object is reused)
# --------------------------------------------------------------------------
@lru_cache(maxsize=None)
def _build_actor_call(B, TB, num_tiles, out_dtype):
    def resident(shape):
        # Same block every grid step -> DMA'd once; single-buffer if supported.
        if _SINGLE_BUFFER_WEIGHTS:
            return pl.BlockSpec(shape, lambda i: (0, 0),
                                pipeline_mode=pl.Buffered(1))
        return pl.BlockSpec(shape, lambda i: (0, 0))

    flops = 2 * B * (STATE_DIM * H1P + H1P * H2P + H2P * ADP)
    bytes_accessed = (
        4 * B * STATE_DIM                                   # x read (f32)
        + 2 * (STATE_DIM * H1P + H1P * H2P + H2P * ADP)     # bf16 weights
        + 4 * (H1P + H2P + ADP)                             # f32 biases
        + jnp.dtype(out_dtype).itemsize * B * ADP           # output write
    )
    cost = pl.CostEstimate(flops=flops, transcendentals=B * ADP,
                           bytes_accessed=bytes_accessed)

    return pl.pallas_call(
        actor_kernel,
        out_shape=jax.ShapeDtypeStruct((B, ADP), out_dtype),
        grid=(num_tiles,),
        in_specs=[
            pl.BlockSpec((TB, STATE_DIM), lambda i: (i, 0)),   # x: tiled batch
            resident((STATE_DIM, H1P)),
            resident((1, H1P)),
            resident((H1P, H2P)),
            resident((1, H2P)),
            resident((H2P, ADP)),
            resident((1, ADP)),
        ],
        out_specs=pl.BlockSpec((TB, ADP), lambda i: (i, 0)),
        compiler_params=pltpu.CompilerParams(
            dimension_semantics=("parallel",),   # batch axis -> dual TC on v7x
            vmem_limit_bytes=32 << 20,
        ),
        cost_estimate=cost,
    )


def actor_forward(state, padded_params, out_dtype=jnp.float32):
    """state: (B, STATE_DIM) -> (B, ACTION_DIM).

    `padded_params` must come from prepare_params(...).
    """
    w1_p, b1_p, w2_p, b2_p, w3_p, b3_p = padded_params
    B, sd = state.shape
    assert sd == STATE_DIM

    # Batch tile: single tile for tiny batches; otherwise at least 2 tiles so
    # the "parallel" grid axis shards across both v7x TensorCores; cap at 512.
    if B <= 64:
        TB = _round_up(max(B, 8), 8)
    else:
        TB = min(MAX_TB, _round_up(pl.cdiv(B, 2), 8))
    num_tiles = pl.cdiv(B, TB)

    x = state.astype(jnp.float32)   # no host-side padding: (B, 11) goes straight in

    call = _build_actor_call(B, TB, num_tiles, out_dtype)
    out = call(x, w1_p, b1_p, w2_p, b2_p, w3_p, b3_p)
    return out[:, :ACTION_DIM]


# --------------------------------------------------------------------------
# Reference / init (mirrors the PyTorch module)
# --------------------------------------------------------------------------
def init_params(key):
    k1, k2, k3, k4, k5, k6 = jax.random.split(key, 6)

    def uniform(k, shape, bound):
        return jax.random.uniform(k, shape, jnp.float32, -bound, bound)

    w1 = uniform(k1, (STATE_DIM, H1), 1.0 / jnp.sqrt(STATE_DIM))   # (in, out)
    b1 = uniform(k2, (H1,), 1.0 / jnp.sqrt(STATE_DIM))
    w2 = uniform(k3, (H1, H2), 1.0 / jnp.sqrt(H1))
    b2 = uniform(k4, (H2,), 1.0 / jnp.sqrt(H1))
    init_w = 0.003
    w3 = uniform(k5, (H2, ACTION_DIM), init_w)
    b3 = uniform(k6, (ACTION_DIM,), 1.0 / jnp.sqrt(H2))
    return (w1, b1, w2, b2, w3, b3)


def reference_forward(state, params):
    w1, b1, w2, b2, w3, b3 = params
    h = jnp.maximum(state @ w1 + b1, 0.0)
    h = jnp.maximum(h @ w2 + b2, 0.0)
    return jnp.tanh(h @ w3 + b3)


if __name__ == "__main__":
    key = jax.random.PRNGKey(0)
    pkey, skey = jax.random.split(key)
    params = init_params(pkey)
    padded_params = prepare_params(params)   # pad + bf16-cast once, cached

    # bf16 matmuls with f32 accumulation -> loosened tolerance vs f32 reference.
    TOL = 2e-2

    # Small batch (the DDPG actor inference case): single tile, single grid step.
    state = jax.random.normal(skey, (8, STATE_DIM), jnp.float32)
    out = jax.block_until_ready(actor_forward(state, padded_params))
    ref = reference_forward(state, params)
    assert out.shape == (8, ACTION_DIM)
    assert jnp.allclose(out, ref, atol=TOL, rtol=TOL), \
        float(jnp.max(jnp.abs(out - ref)))

    # Larger, non-divisible batch: 2 grid steps (dual-TC path on v7x) and a
    # masked partial boundary tile.
    state_big = jax.random.normal(skey, (300, STATE_DIM), jnp.float32)
    out_big = jax.block_until_ready(actor_forward(state_big, padded_params))
    ref_big = reference_forward(state_big, params)
    assert out_big.shape == (300, ACTION_DIM)
    assert jnp.allclose(out_big, ref_big, atol=TOL, rtol=TOL), \
        float(jnp.max(jnp.abs(out_big - ref_big)))

    print("KERNEL_OK")
</pallas_src>

<mosaic_0001>
module attributes {stable_mosaic.version = 11 : i64} {
  func.func @_copy(%arg0: i32, %arg1: memref<8x128xf32, #tpu.memory_space<vmem>>, %arg2: memref<8x128xf32, #tpu.memory_space<vmem>>) attributes {dimension_semantics = [#tpu.dimension_semantics<arbitrary>], iteration_bounds = array<i64: 2>, scalar_prefetch = 0 : i64, scratch_operands = 0 : i64, tpu.core_type = #tpu.core_type<tc>, window_params = [{pipeline_mode = #tpu.pipeline_mode<synchronous>, transform_indices = @transform_0, window_bounds = array<i64: 8, 128>}, {pipeline_mode = #tpu.pipeline_mode<synchronous>, transform_indices = @transform_1, window_bounds = array<i64: 8, 128>}]} {
    %c0 = arith.constant 0 : index
    %c0_0 = arith.constant 0 : index
    %0 = vector.load %arg1[%c0, %c0_0] : memref<8x128xf32, #tpu.memory_space<vmem>>, vector<8x128xf32>
    %c0_1 = arith.constant 0 : index
    %c0_2 = arith.constant 0 : index
    %1 = vector.load %arg2[%c0_1, %c0_2] : memref<8x128xf32, #tpu.memory_space<vmem>>, vector<8x128xf32>
    tpu.vector_store %arg2[%c0_1, %c0_2], %0 {strides = array<i32>} : memref<8x128xf32, #tpu.memory_space<vmem>>, vector<8x128xf32>,
    return
  }
  func.func @transform_0(%arg0: i32) -> (i32, i32) {
    %c0_i32 = arith.constant 0 : i32
    %c0_i32_0 = arith.constant 0 : i32
    %c0_i32_1 = arith.constant 0 : i32
    return %c0_i32, %c0_i32_0 : i32, i32
  }
  func.func @transform_1(%arg0: i32) -> (i32, i32) {
    %c0_i32 = arith.constant 0 : i32
    %c0_i32_0 = arith.constant 0 : i32
    %c0_i32_1 = arith.constant 0 : i32
    return %c0_i32, %c0_i32_0 : i32, i32
  }
}

module attributes {stable_mosaic.version = 11 : i64} {
  func.func @actor_kernel(%arg0: i32, %arg1: memref<8x11xf32, #tpu.memory_space<vmem>>, %arg2: memref<11x512xbf16, #tpu.memory_space<vmem>>, %arg3: memref<1x512xf32, #tpu.memory_space<vmem>>, %arg4: memref<512x384xbf16, #tpu.memory_space<vmem>>, %arg5: memref<1x384xf32, #tpu.memory_space<vmem>>, %arg6: memref<384x128xbf16, #tpu.memory_space<vmem>>, %arg7: memref<1x128xf32, #tpu.memory_space<vmem>>, %arg8: memref<8x128xf32, #tpu.memory_space<vmem>>) attributes {dimension_semantics = [#tpu.dimension_semantics<parallel>], iteration_bounds = array<i64: 1>, scalar_prefetch = 0 : i64, scratch_operands = 0 : i64, tpu.core_type = #tpu.core_type<tc>, window_params = [{transform_indices = @transform_0, window_bounds = array<i64: 8, 11>}, {pipeline_mode = #tpu.pipeline_mode<synchronous>, transform_indices = @transform_1, window_bounds = array<i64: 11, 512>}, {pipeline_mode = #tpu.pipeline_mode<synchronous>, transform_indices = @transform_2, window_bounds = array<i64: 1, 512>}, {pipeline_mode = #tpu.pipeline_mode<synchronous>, transform_indices = @transform_3, window_bounds = array<i64: 512, 384>}, {pipeline_mode = #tpu.pipeline_mode<synchronous>, transform_indices = @transform_4, window_bounds = array<i64: 1, 384>}, {pipeline_mode = #tpu.pipeline_mode<synchronous>, transform_indices = @transform_5, window_bounds = array<i64: 384, 128>}, {pipeline_mode = #tpu.pipeline_mode<synchronous>, transform_indices = @transform_6, window_bounds = array<i64: 1, 128>}, {transform_indices = @transform_7, window_bounds = array<i64: 8, 128>}]} {
    %c0 = arith.constant 0 : index
    %c0_0 = arith.constant 0 : index
    %0 = vector.load %arg1[%c0, %c0_0] : memref<8x11xf32, #tpu.memory_space<vmem>>, vector<8x11xf32>
    %1 = arith.truncf %0 : vector<8x11xf32> to vector<8x11xbf16>
    %c0_1 = arith.constant 0 : index
    %c0_2 = arith.constant 0 : index
    %2 = vector.load %arg2[%c0_1, %c0_2] : memref<11x512xbf16, #tpu.memory_space<vmem>>, vector<11x512xbf16>
    %cst = arith.constant dense<0.000000e+00> : vector<8x512xf32>
    %3 = tpu.matmul %1, %2, %cst {dimension_numbers = #tpu.dot_dimension_numbers<[1], [0], [0], [1], [0, 0, 1, 1], [], []>} : vector<8x11xbf16>, vector<11x512xbf16>, vector<8x512xf32> -> vector<8x512xf32>
    %c0_3 = arith.constant 0 : index
    %c0_4 = arith.constant 0 : index
    %4 = vector.load %arg3[%c0_3, %c0_4] : memref<1x512xf32, #tpu.memory_space<vmem>>, vector<1x512xf32>
    %5 = vector.broadcast %4 : vector<1x512xf32> to vector<8x512xf32>
    %6 = arith.addf %3, %5 : vector<8x512xf32>
    %cst_5 = arith.constant 0.000000e+00 : f32
    %7 = vector.broadcast %cst_5 : f32 to vector<8x512xf32>
    %8 = arith.maximumf %6, %7 : vector<8x512xf32>
    %9 = arith.truncf %8 : vector<8x512xf32> to vector<8x512xbf16>
    %c0_6 = arith.constant 0 : index
    %c0_7 = arith.constant 0 : index
    %10 = vector.load %arg4[%c0_6, %c0_7] : memref<512x384xbf16, #tpu.memory_space<vmem>>, vector<512x384xbf16>
    %cst_8 = arith.constant dense<0.000000e+00> : vector<8x384xf32>
    %11 = tpu.matmul %9, %10, %cst_8 {dimension_numbers = #tpu.dot_dimension_numbers<[1], [0], [0], [1], [0, 0, 1, 1], [], []>} : vector<8x512xbf16>, vector<512x384xbf16>, vector<8x384xf32> -> vector<8x384xf32>
    %c0_9 = arith.constant 0 : index
    %c0_10 = arith.constant 0 : index
    %12 = vector.load %arg5[%c0_9, %c0_10] : memref<1x384xf32, #tpu.memory_space<vmem>>, vector<1x384xf32>
    %13 = vector.broadcast %12 : vector<1x384xf32> to vector<8x384xf32>
    %14 = arith.addf %11, %13 : vector<8x384xf32>
    %cst_11 = arith.constant 0.000000e+00 : f32
    %15 = vector.broadcast %cst_11 : f32 to vector<8x384xf32>
    %16 = arith.maximumf %14, %15 : vector<8x384xf32>
    %17 = arith.truncf %16 : vector<8x384xf32> to vector<8x384xbf16>
    %c0_12 = arith.constant 0 : index
    %c0_13 = arith.constant 0 : index
    %18 = vector.load %arg6[%c0_12, %c0_13] : memref<384x128xbf16, #tpu.memory_space<vmem>>, vector<384x128xbf16>
    %cst_14 = arith.constant dense<0.000000e+00> : vector<8x128xf32>
    %19 = tpu.matmul %17, %18, %cst_14 {dimension_numbers = #tpu.dot_dimension_numbers<[1], [0], [0], [1], [0, 0, 1, 1], [], []>} : vector<8x384xbf16>, vector<384x128xbf16>, vector<8x128xf32> -> vector<8x128xf32>
    %c0_15 = arith.constant 0 : index
    %c0_16 = arith.constant 0 : index
    %20 = vector.load %arg7[%c0_15, %c0_16] : memref<1x128xf32, #tpu.memory_space<vmem>>, vector<1x128xf32>
    %21 = vector.broadcast %20 : vector<1x128xf32> to vector<8x128xf32>
    %22 = arith.addf %19, %21 : vector<8x128xf32>
    %23 = math.tanh %22 : vector<8x128xf32>
    %c0_17 = arith.constant 0 : index
    %c0_18 = arith.constant 0 : index
    %24 = vector.load %arg8[%c0_17, %c0_18] : memref<8x128xf32, #tpu.memory_space<vmem>>, vector<8x128xf32>
    tpu.vector_store %arg8[%c0_17, %c0_18], %23 {strides = array<i32>} : memref<8x128xf32, #tpu.memory_space<vmem>>, vector<8x128xf32>,
    return
  }
  func.func @transform_0(%arg0: i32) -> (i32, i32) {
    %c0_i32 = arith.constant 0 : i32
    %c0_i32_0 = arith.constant 0 : i32
    return %arg0, %c0_i32 : i32, i32
  }
  func.func @transform_1(%arg0: i32) -> (i32, i32) {
    %c0_i32 = arith.constant 0 : i32
    %c0_i32_0 = arith.constant 0 : i32
    %c0_i32_1 = arith.constant 0 : i32
    return %c0_i32, %c0_i32_0 : i32, i32
  }
  func.func @transform_2(%arg0: i32) -> (i32, i32) {
    %c0_i32 = arith.constant 0 : i32
    %c0_i32_0 = arith.constant 0 : i32
    %c0_i32_1 = arith.constant 0 : i32
    return %c0_i32, %c0_i32_0 : i32, i32
  }
  func.func @transform_3(%arg0: i32) -> (i32, i32) {
    %c0_i32 = arith.constant 0 : i32
    %c0_i32_0 = arith.constant 0 : i32
    %c0_i32_1 = arith.constant 0 : i32
    return %c0_i32, %c0_i32_0 : i32, i32
  }
  func.func @transform_4(%arg0: i32) -> (i32, i32) {
    %c0_i32 = arith.constant 0 : i32
    %c0_i32_0 = arith.constant 0 : i32
    %c0_i32_1 = arith.constant 0 : i32
    return %c0_i32, %c0_i32_0 : i32, i32
  }
  func.func @transform_5(%arg0: i32) -> (i32, i32) {
    %c0_i32 = arith.constant 0 : i32
    %c0_i32_0 = arith.constant 0 : i32
    %c0_i32_1 = arith.constant 0 : i32
    return %c0_i32, %c0_i32_0 : i32, i32
  }
  func.func @transform_6(%arg0: i32) -> (i32, i32) {
    %c0_i32 = arith.constant 0 : i32
    %c0_i32_0 = arith.constant 0 : i32
    %c0_i32_1 = arith.constant 0 : i32
    return %c0_i32, %c0_i32_0 : i32, i32
  }
  func.func @transform_7(%arg0: i32) -> (i32, i32) {
    %c0_i32 = arith.constant 0 : i32
    %c0_i32_0 = arith.constant 0 : i32
    return %arg0, %c0_i32 : i32, i32
  }
}

</mosaic_0001>

<bundles_post_ra>
// kernel: tpu_custom_call.1
= control target key start
LH: loop header
LB: loop body
LE: loop exit
PB: predicated region body
PF: predicated region fallthrough
CT: control target
= control target key end

     0   :  { %6 = vsyncpa [#allocation3], 0  ;;  %s286_s0 = inlined_call_operand.hbm [shape: f32[8,128], index: 0, kind: input, shape index: {}]   ;;  %s287_s1 = inlined_call_operand.hbm [shape: f32[8,128], index: 1, kind: output, shape index: {}]  }
   0x1   :  { %7 = vsyncpa [#allocation4], 0  ;;  %s269_s6 = smov 0  }
   0x2 LB: > { %s148_s7 = sadd.s32 4294967295, %s255_s6   ;;  %p149_p0 = scmp.ge.s32.totalorder %s255_s6, 1  ;;  %s255_s6 = sphi %s269_s6, %s13_s6  }
   0x3   : > { %p60_p1 = scmp.lt.s32.totalorder %s255_s6, 3  ;;  %s72_s10 = sshll.u32 %s286_s0, 4  ;;  %s73_s10 = int_to_ptr.hbm [resolvable:$true] %s72_s10 }
   0x4   : > { %p169_p3 = scmp.eq.s32.totalorder %s148_s7, 0  ;;  %s257_s11 = smov [#allocation2]  }
   0x5   : > { %p61_p2 = pnand %p149_p0, %p60_p1  ;;  %s74_s12 = sshll.u32 %s257_s11, 4  ;;  %s75_s12 = int_to_ptr.vmem [resolvable:$true] %s74_s12 }
   0x7   : > { %p165_p4 = pneg %p61_p2  ;;  %87 = sbr.rel (%p61_p2) target bundleno = 19 (0x13), region = 24 }
   0x9   : > { %p166_p5 = pnand %p169_p3, %p165_p4 }
   0xb   : > { %168 = dma.hbm_to_vmem [thread:$0]  (!%p166_p5), %s73_s10, 128, %s75_s12, [#allocation3]  }
   0xc   : > { %246 = dma.done.wait (%p169_p3), [#allocation3], 128  }
   0xd   : > { %248 = vsyncadd (%p169_p3), [#allocation3], 4294967168  ;;  %s258_s13 = smov [#allocation5]   ;;  %s108_s17 = sshll.u32 %s287_s1, 4  ;;  %v98_v0 = vld [vmem:[#allocation2] sm:$0xff]  ;;  %s109_s17 = int_to_ptr.hbm [resolvable:$true] %s108_s17 }
   0xe   : > { %s106_s14 = sshll.u32 %s258_s13, 4  ;;  %p171_p6 = scmp.eq.s32.totalorder %s148_s7, 1  ;;  %99 = vst [vmem:[#allocation5] sm:$0xff] %v98_v0  ;;  %s107_s14 = int_to_ptr.vmem [resolvable:$true] %s106_s14 }
  0x10   : > { %162 = dma.vmem_to_hbm [thread:$0]  (%p171_p6), %s107_s14, 128, %s109_s17, [#allocation4]  }
  0x11   : > { %250 = dma.done.wait (%p171_p6), [#allocation4], 128  }
  0x12   : > { %252 = vsyncadd (%p171_p6), [#allocation4], 4294967168 }
  0x13 PF: > { %s13_s6 = sadd.s32 1, %s255_s6  }
  0x14   : > { %p10_p7 = scmp.ge.s32.totalorder %s13_s6, 4  }
  0x16   :  { %12 = sbr.rel (!%p10_p7) target bundleno = 2 (0x2), region = 53 }
  0x1b   :  { %122 = vsyncpa [#allocation3], 1 }
  0x1c   :  { %124 = vsyncpa [#allocation3 + $0x1], 1 }
  0x1d   :  { %125 = vsyncpa [#allocation4], 1 }
  0x1e   :  { %127 = vsyncpa [#allocation4 + $0x1], 1 }

// kernel: tpu_custom_call.1
= control target key start
LH: loop header
LB: loop body
LE: loop exit
PB: predicated region body
PF: predicated region fallthrough
CT: control target
= control target key end

     0   :  { %12 = vsyncpa [#allocation3], 0  ;;  %s2185_s0 = inlined_call_operand.hbm [shape: f32[8,11], index: 0, kind: input, shape index: {}]   ;;  %s2186_s1 = inlined_call_operand.hbm [shape: bf16[11,512], index: 1, kind: input, shape index: {}]   ;;  %s2187_s2 = inlined_call_operand.hbm [shape: f32[1,512], index: 2, kind: input, shape index: {}]   ;;  %s2188_s3 = inlined_call_operand.hbm [shape: bf16[512,384], index: 3, kind: input, shape index: {}]   ;;  %s2189_s4 = inlined_call_operand.vmem [shape: f32[1,384], index: 4, kind: input, shape index: {}]   ;;  %s2190_s5 = inlined_call_operand.hbm [shape: bf16[384,128], index: 5, kind: input, shape index: {}]   ;;  %s2191_s6 = inlined_call_operand.vmem [shape: f32[1,128], index: 6, kind: input, shape index: {}]   ;;  %s2192_s7 = inlined_call_operand.hbm [shape: f32[8,128], index: 7, kind: output, shape index: {}]  }
   0x1   :  { %13 = vsyncpa [#allocation6], 0 }
   0x2   :  { %14 = vsyncpa [#allocation9], 0  ;;  %s31_s26 = sshll.u32 %s2186_s1, 4  ;;  %s32_s26 = int_to_ptr.hbm [resolvable:$true] %s31_s26 }
   0x3   :  { %15 = vsyncpa [#allocation4], 0  ;;  %s2072_s27 = smov [#allocation5]   ;;  %s55_s8 = sshll.u32 %s2188_s3, 4  ;;  %s56_s8 = int_to_ptr.hbm [resolvable:$true] %s55_s8 }
   0x4   :  { %s33_s28 = sshll.u32 %s2072_s27, 4  ;;  %s2073_s9 = smov 256   ;;  %s34_s28 = int_to_ptr.vmem [resolvable:$true] %s33_s28 }
   0x5   :  { %s2074_s10 = smov 16   ;;  %s2075_s11 = smov [#allocation8]  }
   0x6   :  { %39 = dma.hbm_to_vmem [thread:$0]  %s32_s26, 512, %s34_s28, [#allocation6], %s2073_s9, %s2073_s9, %s2074_s10  }
   0x7   :  { %s57_s12 = sshll.u32 %s2075_s11, 4  ;;  %s2076_s13 = smov 192   ;;  %s58_s12 = int_to_ptr.vmem [resolvable:$true] %s57_s12 }
   0x8   :  { %s2077_s14 = smov 12   ;;  %s21_s16 = sshll.u32 %s2185_s0, 4  ;;  %s22_s16 = int_to_ptr.hbm [resolvable:$true] %s21_s16 }
   0x9   :  { %63 = dma.hbm_to_vmem [thread:$0]  %s56_s8, 12288, %s58_s12, [#allocation9], %s2076_s13, %s2076_s13, %s2077_s14  }
   0xa   :  { %s2078_s17 = smov [#allocation2]   ;;  %s45_s20 = sshll.u32 %s2187_s2, 4  ;;  %s46_s20 = int_to_ptr.hbm [resolvable:$true] %s45_s20 }
   0xb   :  { %s23_s18 = sshll.u32 %s2078_s17, 4  ;;  %s2079_s21 = smov [#allocation7]   ;;  %s24_s18 = int_to_ptr.vmem [resolvable:$true] %s23_s18 }
   0xc   :  { %26 = dma.hbm_to_vmem [thread:$0]  %s22_s16, 128, %s24_s18, [#allocation3]  }
   0xd   :  { %s47_s22 = sshll.u32 %s2079_s21, 4  ;;  %s70_s25 = sshll.u32 %s2190_s5, 4  ;;  %s48_s22 = int_to_ptr.vmem [resolvable:$true] %s47_s22  ;;  %s71_s25 = int_to_ptr.hbm [resolvable:$true] %s70_s25 }
   0xe   :  { %50 = dma.hbm_to_vmem [thread:$0]  %s46_s20, 64, %s48_s22, [#allocation6]  }
   0xf   :  { %s2080_s0 = smov [#allocation10]   ;;  %s2081_s27 = smov 64  }
  0x10   :  { %s72_s26 = sshll.u32 %s2080_s0, 4  ;;  %s2082_s28 = smov 4   ;;  %s73_s26 = int_to_ptr.vmem [resolvable:$true] %s72_s26 }
  0x11   :  { %78 = dma.hbm_to_vmem [thread:$0]  %s71_s25, 3072, %s73_s26, [#allocation9], %s2081_s27, %s2081_s27, %s2082_s28  }
  0x12   :  { %2064 = dma.done.wait [#allocation3], 128  }
  0x13   :  { %2065 = vsyncadd [#allocation3], 4294967168 }
  0x14   :  { %2066 = dma.done.wait [#allocation6], 576  }
  0x15   :  { %2067 = vsyncadd [#allocation6], 4294966720 }
  0x16   :  { %2068 = dma.done.wait [#allocation9], 15360  }
  0x17   :  { %2069 = vsyncadd [#allocation9], 4294951936  ;;  %vm138_vm0 = vcmask 1044480   ;;  %vm139_vm1 = vcmask 1045504   ;;  %v2083_v0 = vmov 65535   ;;  %v102_v12 = vld [vmem:[#allocation2] sm:$0xff] }
  0x18   :  { %v140_v1 = vsel %vm138_vm0, 4294967295, %v2083_v0  ;;  %v1282_v3 = vld [vmem:[#allocation5] sm:$0xf]  ;;  %v1782_v4 = vld [vmem:[#allocation5 + $0xc] sm:$0x30]  ;;  %v2140_v22 = vpack.c.bf16 %v102_v12, %v102_v12  ;;  %vm134_vm2 = vcmask 89088  }
  0x19   :  { %v141_v2 = vsel %vm139_vm1, %v140_v1, 0  ;;  %v1780_v5 = vld [vmem:[#allocation5 + $0x4] sm:$0xf]  ;;  %v1283_v6 = vor.u32 %v1782_v4, %v1282_v3  ;;  %v1284_v7 = vld [vmem:[#allocation5 + $0x10] sm:$0x30]  ;;  %s2084_s30 = smov [#allocation11]  }
  0x1a   :  { %v1290_v8 = vld [vmem:[#allocation5 + $0x8] sm:$0xf]  ;;  %v1783_v9 = vld [vmem:[#allocation5 + $0x14] sm:$0x30]  ;;  %v1287_v10 = vor.u32 %v1780_v5, %v1284_v7  ;;  %v1781_v13 = vld [vmem:[#allocation5 + $0xc] sm:$0xf] }
  0x1b   :  { %v1291_v11 = vor.u32 %v1783_v9, %v1290_v8  ;;  %v1292_v14 = vld [vmem:[#allocation5 + $0x18] sm:$0x30]  ;;  %v143_v15 = vand.u32 %v1283_v6, %v141_v2  ;;  %v1482_v17 = vld [vmem:[#allocation8 + $0x168] sm:$0xf]  ;;  %v1830_v18 = vld [vmem:[#allocation8 + $0x170] sm:$0xf0] }
  0x1c   :  { %v1295_v16 = vor.u32 %v1781_v13, %v1292_v14  ;;  %v1470_v19 = vld [vmem:[#allocation8 + $0x150] sm:$0xf]  ;;  %v146_v20 = vand.u32 %v1287_v10, %v141_v2  ;;  %v1483_v23 = vor.u32 %v1830_v18, %v1482_v17  ;;  %v1827_v24 = vld [vmem:[#allocation8 + $0x158] sm:$0xf0]  ;;  %v1386_v25 = vld [vmem:[#allocation8 + $0xa8] sm:$0xf] }
  0x1d   :  { %v149_v21 = vand.u32 %v1291_v11, %v141_v2  ;;  %v1806_v26 = vld [vmem:[#allocation8 + $0xb0] sm:$0xf0]  ;;  %161 = vmatpush.bf16.msra.mxu3 %v143_v15  ;;  %v1578_v29 = vld [vmem:[#allocation8 + $0x228] sm:$0xf]  ;;  %v1374_v32 = vld [vmem:[#allocation8 + $0x90] sm:$0xf]  ;;  %v1471_v34 = vor.u32 %v1827_v24, %v1470_v19 }
  0x1e   :  { %v152_v27 = vand.u32 %v1295_v16, %v141_v2  ;;  %v1387_v28 = vor.u32 %v1806_v26, %v1386_v25  ;;  %v1854_v30 = vld [vmem:[#allocation8 + $0x230] sm:$0xf0]  ;;  %174 = vmatpush.bf16.msra.mxu1 %v146_v20  ;;  %v1803_v33 = vld [vmem:[#allocation8 + $0x98] sm:$0xf0]  ;;  %v1566_v35 = vld [vmem:[#allocation8 + $0x210] sm:$0xf] }
  0x1f   :  { %187 = vmatpush.bf16.msra.mxu2 %v149_v21  ;;  %v1579_v31 = vor.u32 %v1854_v30, %v1578_v29  ;;  %v1851_v36 = vld [vmem:[#allocation8 + $0x218] sm:$0xf0]  ;;  %v1458_v37 = vld [vmem:[#allocation8 + $0x138] sm:$0xf]  ;;  %v1824_v38 = vld [vmem:[#allocation8 + $0x140] sm:$0xf0]  ;;  %v1375_v39 = vor.u32 %v1803_v33, %v1374_v32 }
  0x20   :  { %1296 = vmatmul.msk.bf16.vlgmr.msra.gmra.mxu3 %vm134_vm2, %v2140_v22  ;;  %862 = vmatpush.bf16.msra.mxu0 %v1387_v28  ;;  %v1362_v40 = vld [vmem:[#allocation8 + $0x78] sm:$0xf]  ;;  %v1800_v41 = vld [vmem:[#allocation8 + $0x80] sm:$0xf0]  ;;  %v1567_v42 = vor.u32 %v1851_v36, %v1566_v35  ;;  %v1459_v43 = vor.u32 %v1824_v38, %v1458_v37  ;;  %v1446_v46 = vld [vmem:[#allocation8 + $0x120] sm:$0xf] }
  0x21   :  { %200 = vmatpush.bf16.msrb.mxu3 %v152_v27  ;;  %1297 = vmatmul.msk.bf16.vlgmr.msra.gmra.mxu1 %vm134_vm2, %v2140_v22  ;;  %v1554_v44 = vld [vmem:[#allocation8 + $0x1f8] sm:$0xf]  ;;  %v1848_v45 = vld [vmem:[#allocation8 + $0x200] sm:$0xf0]  ;;  %v1821_v47 = vld [vmem:[#allocation8 + $0x128] sm:$0xf0]  ;;  %v1363_v48 = vor.u32 %v1800_v41, %v1362_v40 }
  0x22   :  { %875 = vmatpush.bf16.msrb.mxu1 %v1483_v23  ;;  %1298 = vmatmul.msk.bf16.vlgmr.msra.gmra.mxu2 %vm134_vm2, %v2140_v22  ;;  %v1350_v49 = vld [vmem:[#allocation8 + $0x60] sm:$0xf]  ;;  %v1797_v50 = vld [vmem:[#allocation8 + $0x68] sm:$0xf0]  ;;  %v1674_v51 = vld [vmem:[#allocation8 + $0x2e8] sm:$0xf]  ;;  %v1555_v52 = vor.u32 %v1848_v45, %v1554_v44  ;;  %v1447_v54 = vor.u32 %v1821_v47, %v1446_v46 }
  0x23   :  { %888 = vmatpush.bf16.msrb.mxu2 %v1579_v31  ;;  %v1878_v53 = vld [vmem:[#allocation8 + $0x2f0] sm:$0xf0]  ;;  %v1434_v55 = vld [vmem:[#allocation8 + $0x108] sm:$0xf]  ;;  %v1542_v56 = vld [vmem:[#allocation8 + $0x1e0] sm:$0xf]  ;;  %v1351_v60 = vor.u32 %v1797_v50, %v1350_v49 }
  0x24   :  { %863 = vmatpush.bf16.msra.mxu0 %v1375_v39  ;;  %v1845_v57 = vld [vmem:[#allocation8 + $0x1e8] sm:$0xf0]  ;;  %v1675_v58 = vor.u32 %v1878_v53, %v1674_v51  ;;  %v1818_v59 = vld [vmem:[#allocation8 + $0x110] sm:$0xf0]  ;;  %v1662_v61 = vld [vmem:[#allocation8 + $0x2d0] sm:$0xf] }
  0x25   :  { %v1875_v62 = vld [vmem:[#allocation8 + $0x2d8] sm:$0xf0]  ;;  %v1338_v63 = vld [vmem:[#allocation8 + $0x48] sm:$0xf]  ;;  %v1794_v0 = vld [vmem:[#allocation8 + $0x50] sm:$0xf0]  ;;  %v1543_v2 = vor.u32 %v1845_v57, %v1542_v56  ;;  %v1435_v3 = vor.u32 %v1818_v59, %v1434_v55 }
  0x26   :  { %876 = vmatpush.bf16.msrb.mxu1 %v1471_v34  ;;  %901 = vmatpush.bf16.msra.mxu3 %v1675_v58  ;;  %v1663_v1 = vor.u32 %v1875_v62, %v1662_v61  ;;  %v1530_v4 = vld [vmem:[#allocation8 + $0x1c8] sm:$0xf]  ;;  %v1842_v5 = vld [vmem:[#allocation8 + $0x1d0] sm:$0xf0]  ;;  %v1650_v6 = vld [vmem:[#allocation8 + $0x2b8] sm:$0xf]  ;;  %v1339_v9 = vor.u32 %v1794_v0, %v1338_v63 }
  0x27   :  { %889 = vmatpush.bf16.msrb.mxu2 %v1567_v42  ;;  %v1422_v7 = vld [vmem:[#allocation8 + $0xf0] sm:$0xf]  ;;  %v1815_v8 = vld [vmem:[#allocation8 + $0xf8] sm:$0xf0]  ;;  %v1872_v10 = vld [vmem:[#allocation8 + $0x2c0] sm:$0xf0]  ;;  %v1531_v14 = vor.u32 %v1842_v5, %v1530_v4 }
  0x28   :  { %864 = vmatpush.bf16.msra.mxu0 %v1363_v48  ;;  %v1326_v11 = vld [vmem:[#allocation8 + $0x30] sm:$0xf]  ;;  %v1791_v12 = vld [vmem:[#allocation8 + $0x38] sm:$0xf0]  ;;  %v1651_v13 = vor.u32 %v1872_v10, %v1650_v6  ;;  %v1638_v15 = vld [vmem:[#allocation8 + $0x2a0] sm:$0xf]  ;;  %v1423_v17 = vor.u32 %v1815_v8, %v1422_v7 }
  0x29   :  { %v1869_v16 = vld [vmem:[#allocation8 + $0x2a8] sm:$0xf0]  ;;  %v1518_v18 = vld [vmem:[#allocation8 + $0x1b0] sm:$0xf]  ;;  %v1839_v19 = vld [vmem:[#allocation8 + $0x1b8] sm:$0xf0]  ;;  %v1327_v23 = vor.u32 %v1791_v12, %v1326_v11 }
  0x2a   :  { %877 = vmatpush.bf16.msrb.mxu1 %v1459_v43  ;;  %902 = vmatpush.bf16.msra.mxu3 %v1663_v1  ;;  %v1410_v20 = vld [vmem:[#allocation8 + $0xd8] sm:$0xf]  ;;  %v1812_v21 = vld [vmem:[#allocation8 + $0xe0] sm:$0xf0]  ;;  %v1639_v26 = vor.u32 %v1869_v16, %v1638_v15  ;;  %v1519_v27 = vor.u32 %v1839_v19, %v1518_v18  ;;  %v1626_v28 = vld [vmem:[#allocation8 + $0x288] sm:$0xf] }
  0x2b   :  { %890 = vmatpush.bf16.msrb.mxu2 %v1555_v52  ;;  %v1314_v24 = vld [vmem:[#allocation8 + $0x18] sm:$0xf]  ;;  %v1788_v25 = vld [vmem:[#allocation8 + $0x20] sm:$0xf0]  ;;  %v1866_v29 = vld [vmem:[#allocation8 + $0x290] sm:$0xf0]  ;;  %v1411_v30 = vor.u32 %v1812_v21, %v1410_v20 }
  0x2c   :  { %865 = vmatpush.bf16.msra.mxu0 %v1351_v60  ;;  %v1398_v31 = vld [vmem:[#allocation8 + $0xc0] sm:$0xf]  ;;  %v1506_v32 = vld [vmem:[#allocation8 + $0x198] sm:$0xf]  ;;  %v1836_v33 = vld [vmem:[#allocation8 + $0x1a0] sm:$0xf0]  ;;  %v1315_v36 = vor.u32 %v1788_v25, %v1314_v24  ;;  %v1627_v40 = vor.u32 %v1866_v29, %v1626_v28 }
  0x2d   :  { %v1809_v34 = vld [vmem:[#allocation8 + $0xc8] sm:$0xf0]  ;;  %v1484_v35 = vld [vmem:[#allocation8 + $0x174] sm:$0xf0]  ;;  %v1302_v37 = vld [vmem:[#allocation8] sm:$0xf]  ;;  %v1507_v41 = vor.u32 %v1836_v33, %v1506_v32 }
  0x2e   :  { %878 = vmatpush.bf16.msrb.mxu1 %v1447_v54  ;;  %903 = vmatpush.bf16.msra.mxu3 %v1651_v13  ;;  %v1785_v38 = vld [vmem:[#allocation8 + $0x8] sm:$0xf0]  ;;  %v1388_v42 = vld [vmem:[#allocation8 + $0xb4] sm:$0xf0]  ;;  %v1614_v43 = vld [vmem:[#allocation8 + $0x270] sm:$0xf]  ;;  %v1399_v45 = vor.u32 %v1809_v34, %v1398_v31 }
  0x2f   :  { %891 = vmatpush.bf16.msrb.mxu2 %v1543_v2  ;;  %v1805_v39 = vld [vmem:[#allocation8 + $0xac] sm:$0xf]  ;;  %v1863_v44 = vld [vmem:[#allocation8 + $0x278] sm:$0xf0]  ;;  %v1494_v46 = vld [vmem:[#allocation8 + $0x180] sm:$0xf]  ;;  %v1303_v50 = vor.u32 %v1785_v38, %v1302_v37 }
  0x30   :  { %1299 = vmatmul.msk.bf16.vlgmr.msrb.gmra.mxu3 %vm134_vm2, %v2140_v22  ;;  %866 = vmatpush.bf16.msra.mxu0 %v1339_v9  ;;  %v1829_v22 = vld [vmem:[#allocation8 + $0x16c] sm:$0xf]  ;;  %v1826_v49 = vld [vmem:[#allocation8 + $0x154] sm:$0xf]  ;;  %v1580_v52 = vld [vmem:[#allocation8 + $0x234] sm:$0xf0]  ;;  %v1391_v54 = vor.u32 %v1805_v39, %v1388_v42  ;;  %v1615_v56 = vor.u32 %v1863_v44, %v1614_v43 }
  0x31   :  { %v1833_v47 = vld [vmem:[#allocation8 + $0x188] sm:$0xf0]  ;;  %v1487_v48 = vor.u32 %v1829_v22, %v1484_v35  ;;  %v1472_v53 = vld [vmem:[#allocation8 + $0x15c] sm:$0xf0]  ;;  %v1802_v55 = vld [vmem:[#allocation8 + $0x94] sm:$0xf] }
  0x32   :  { %879 = vmatpush.bf16.msrb.mxu1 %v1435_v3  ;;  %904 = vmatpush.bf16.msra.mxu3 %v1639_v26  ;;  %v1853_v51 = vld [vmem:[#allocation8 + $0x22c] sm:$0xf]  ;;  %v1495_v57 = vor.u32 %v1833_v47, %v1494_v46  ;;  %v1376_v58 = vld [vmem:[#allocation8 + $0x9c] sm:$0xf0]  ;;  %v1602_v59 = vld [vmem:[#allocation8 + $0x258] sm:$0xf]  ;;  %v1475_v62 = vor.u32 %v1826_v49, %v1472_v53 }
  0x33   :  { %892 = vmatpush.bf16.msrb.mxu2 %v1531_v14  ;;  %v1860_v60 = vld [vmem:[#allocation8 + $0x260] sm:$0xf0]  ;;  %v1583_v61 = vor.u32 %v1853_v51, %v1580_v52  ;;  %v1850_v63 = vld [vmem:[#allocation8 + $0x214] sm:$0xf]  ;;  %v1568_v0 = vld [vmem:[#allocation8 + $0x21c] sm:$0xf0]  ;;  %v1379_v3 = vor.u32 %v1802_v55, %v1376_v58 }
  0x34   :  { %867 = vmatpush.bf16.msra.mxu0 %v1327_v23  ;;  %v1823_v1 = vld [vmem:[#allocation8 + $0x13c] sm:$0xf]  ;;  %v1460_v2 = vld [vmem:[#allocation8 + $0x144] sm:$0xf0]  ;;  %v1603_v4 = vor.u32 %v1860_v60, %v1602_v59  ;;  %v1571_v7 = vor.u32 %v1850_v63, %v1568_v0  ;;  %v1820_v11 = vld [vmem:[#allocation8 + $0x124] sm:$0xf] }
  0x35   :  { %v1799_v5 = vld [vmem:[#allocation8 + $0x7c] sm:$0xf]  ;;  %v1364_v6 = vld [vmem:[#allocation8 + $0x84] sm:$0xf0]  ;;  %v1463_v8 = vor.u32 %v1823_v1, %v1460_v2  ;;  %v1448_v12 = vld [vmem:[#allocation8 + $0x12c] sm:$0xf0] }
  0x36   :  { %880 = vmatpush.bf16.msrb.mxu1 %v1423_v17  ;;  %905 = vmatpush.bf16.msra.mxu3 %v1627_v40  ;;  %v1847_v9 = vld [vmem:[#allocation8 + $0x1fc] sm:$0xf]  ;;  %v1556_v10 = vld [vmem:[#allocation8 + $0x204] sm:$0xf0]  ;;  %v1367_v13 = vor.u32 %v1799_v5, %v1364_v6  ;;  %v1796_v14 = vld [vmem:[#allocation8 + $0x64] sm:$0xf]  ;;  %v1451_v17 = vor.u32 %v1820_v11, %v1448_v12 }
  0x37   :  { %893 = vmatpush.bf16.msrb.mxu2 %v1519_v27  ;;  %v1352_v15 = vld [vmem:[#allocation8 + $0x6c] sm:$0xf0]  ;;  %v1559_v16 = vor.u32 %v1847_v9, %v1556_v10  ;;  %v1844_v18 = vld [vmem:[#allocation8 + $0x1e4] sm:$0xf]  ;;  %v1817_v20 = vld [vmem:[#allocation8 + $0x10c] sm:$0xf] }
  0x38   :  { %868 = vmatpush.bf16.msra.mxu0 %v1315_v36  ;;  %v1544_v19 = vld [vmem:[#allocation8 + $0x1ec] sm:$0xf0]  ;;  %v1436_v21 = vld [vmem:[#allocation8 + $0x114] sm:$0xf0]  ;;  %v1355_v23 = vor.u32 %v1796_v14, %v1352_v15  ;;  %v1814_v26 = vld [vmem:[#allocation8 + $0xf4] sm:$0xf] }
  0x39   :  { %v1547_v24 = vor.u32 %v1844_v18, %v1544_v19  ;;  %v1439_v25 = vor.u32 %v1817_v20, %v1436_v21  ;;  %v1424_v27 = vld [vmem:[#allocation8 + $0xfc] sm:$0xf0]  ;;  %v1793_v32 = vld [vmem:[#allocation8 + $0x4c] sm:$0xf]  ;;  %v1340_v33 = vld [vmem:[#allocation8 + $0x54] sm:$0xf0] }
  0x3a   :  { %881 = vmatpush.bf16.msrb.mxu1 %v1411_v30  ;;  %906 = vmatpush.bf16.msra.mxu3 %v1615_v56  ;;  %v1427_v28 = vor.u32 %v1814_v26, %v1424_v27  ;;  %v1590_v29 = vld [vmem:[#allocation8 + $0x240] sm:$0xf]  ;;  %v1857_v30 = vld [vmem:[#allocation8 + $0x248] sm:$0xf0]  ;;  %v1343_v22 = vor.u32 %v1793_v32, %v1340_v33  ;;  %v1532_v35 = vld [vmem:[#allocation8 + $0x1d4] sm:$0xf0] }
  0x3b   :  { %894 = vmatpush.bf16.msrb.mxu2 %v1507_v41  ;;  %v1591_v31 = vor.u32 %v1857_v30, %v1590_v29  ;;  %v1841_v34 = vld [vmem:[#allocation8 + $0x1cc] sm:$0xf]  ;;  %v1676_v37 = vld [vmem:[#allocation8 + $0x2f4] sm:$0xf0]  ;;  %v1811_v40 = vld [vmem:[#allocation8 + $0xdc] sm:$0xf] }
  0x3c   :  { %869 = vmatpush.bf16.msra.mxu0 %v1303_v50  ;;  %v1877_v36 = vld [vmem:[#allocation8 + $0x2ec] sm:$0xf]  ;;  %v1535_v38 = vor.u32 %v1841_v34, %v1532_v35  ;;  %v1412_v41 = vld [vmem:[#allocation8 + $0xe4] sm:$0xf0]  ;;  %v1790_v43 = vld [vmem:[#allocation8 + $0x34] sm:$0xf] }
  0x3d   :  { %v1679_v39 = vor.u32 %v1877_v36, %v1676_v37  ;;  %v1415_v42 = vor.u32 %v1811_v40, %v1412_v41  ;;  %v1328_v44 = vld [vmem:[#allocation8 + $0x3c] sm:$0xf0]  ;;  %v1808_v52 = vld [vmem:[#allocation8 + $0xc4] sm:$0xf]  ;;  %v1400_v53 = vld [vmem:[#allocation8 + $0xcc] sm:$0xf0] }
  0x3e   :  { %882 = vmatpush.bf16.msrb.mxu1 %v1399_v45  ;;  %907 = vmatpush.bf16.msra.mxu3 %v1603_v4  ;;  %v1838_v45 = vld [vmem:[#allocation8 + $0x1b4] sm:$0xf]  ;;  %v1331_v46 = vor.u32 %v1790_v43, %v1328_v44  ;;  %v1520_v47 = vld [vmem:[#allocation8 + $0x1bc] sm:$0xf0]  ;;  %v1787_v55 = vld [vmem:[#allocation8 + $0x1c] sm:$0xf] }
  0x3f   :  { %895 = vmatpush.bf16.msrb.mxu2 %v1495_v57  ;;  %v1664_v49 = vld [vmem:[#allocation8 + $0x2dc] sm:$0xf0]  ;;  %v1523_v50 = vor.u32 %v1838_v45, %v1520_v47  ;;  %v1316_v56 = vld [vmem:[#allocation8 + $0x24] sm:$0xf0]  ;;  %v1835_v57 = vld [vmem:[#allocation8 + $0x19c] sm:$0xf] }
  0x40   :  { %914 = vmatpush.bf16.msrb.mxu0 %v1391_v54  ;;  %v1403_v54 = vor.u32 %v1808_v52, %v1400_v53  ;;  %v1319_v58 = vor.u32 %v1787_v55, %v1316_v56  ;;  %v1508_v59 = vld [vmem:[#allocation8 + $0x1a4] sm:$0xf0]  ;;  %v1871_v60 = vld [vmem:[#allocation8 + $0x2bc] sm:$0xf]  ;;  %v1784_v0 = vld [vmem:[#allocation8 + $0x4] sm:$0xf] }
  0x41   :  { %v1304_v1 = vld [vmem:[#allocation8 + $0xc] sm:$0xf0]  ;;  %v1832_v2 = vld [vmem:[#allocation8 + $0x184] sm:$0xf]  ;;  %v1865_v9 = vld [vmem:[#allocation8 + $0x28c] sm:$0xf] }
  0x42   :  { %927 = vmatpush.bf16.msra.mxu1 %v1487_v48  ;;  %908 = vmatpush.bf16.msra.mxu3 %v1591_v31  ;;  %v1874_v48 = vld [vmem:[#allocation8 + $0x2d4] sm:$0xf]  ;;  %v1496_v4 = vld [vmem:[#allocation8 + $0x18c] sm:$0xf0]  ;;  %v1868_v5 = vld [vmem:[#allocation8 + $0x2a4] sm:$0xf] }
  0x43   :  { %940 = vmatpush.bf16.msra.mxu2 %v1583_v61  ;;  %v1667_v51 = vor.u32 %v1874_v48, %v1664_v49  ;;  %v1652_v61 = vld [vmem:[#allocation8 + $0x2c4] sm:$0xf0]  ;;  %v1640_v6 = vld [vmem:[#allocation8 + $0x2ac] sm:$0xf0]  ;;  %v1628_v10 = vld [vmem:[#allocation8 + $0x294] sm:$0xf0] }
  0x44   :  { %915 = vmatpush.bf16.msrb.mxu0 %v1379_v3  ;;  %v1655_v63 = vor.u32 %v1871_v60, %v1652_v61  ;;  %v1307_v3 = vor.u32 %v1784_v0, %v1304_v1  ;;  %v1631_v11 = vor.u32 %v1865_v9, %v1628_v10  ;;  %v1862_v12 = vld [vmem:[#allocation8 + $0x274] sm:$0xf]  ;;  %v1859_v15 = vld [vmem:[#allocation8 + $0x25c] sm:$0xf]  ;;  %v1856_v19 = vld [vmem:[#allocation8 + $0x244] sm:$0xf] }
  0x45   :  { %v2150_v18 = vld [vmem:[#allocation7] sm:$0xf]  ;;  %v1592_v20 = vld [vmem:[#allocation8 + $0x24c] sm:$0xf0]  ;;  %v1478_v34 = vld [vmem:[#allocation8 + $0x158] sm:$0xf] }
  0x46   :  { %928 = vmatpush.bf16.msra.mxu1 %v1475_v62  ;;  %953 = vmatpush.bf16.msrb.mxu3 %v1679_v39  ;;  %v1511_v62 = vor.u32 %v1835_v57, %v1508_v59  ;;  %v1595_v21 = vor.u32 %v1856_v19, %v1592_v20  ;;  %v1490_v26 = vld [vmem:[#allocation8 + $0x170] sm:$0xf]  ;;  %v1831_v27 = vld [vmem:[#allocation8 + $0x178] sm:$0xf0]  ;;  %v112_v30 = vperm.slane %v2150_v18, 2  ;;  %s1266_s8 = sshll.u32 %s2084_s30, 4  ;;  %s1267_s8 = int_to_ptr.vmem [resolvable:$true] %s1266_s8 }
  0x47   :  { %941 = vmatpush.bf16.msra.mxu2 %v1571_v7  ;;  %v1499_v7 = vor.u32 %v1832_v2, %v1496_v4  ;;  %v1491_v31 = vor.u32 %v1831_v27, %v1490_v26  ;;  %v1394_v37 = vld [vmem:[#allocation8 + $0xb0] sm:$0xf]  ;;  %v1855_v41 = vld [vmem:[#allocation8 + $0x238] sm:$0xf0]  ;;  %v1466_v47 = vld [vmem:[#allocation8 + $0x140] sm:$0xf] }
  0x48   :  { %916 = vmatpush.bf16.msrb.mxu0 %v1367_v13  ;;  %v1616_v13 = vld [vmem:[#allocation8 + $0x27c] sm:$0xf0]  ;;  %v1586_v40 = vld [vmem:[#allocation8 + $0x230] sm:$0xf]  ;;  %v1825_v48 = vld [vmem:[#allocation8 + $0x148] sm:$0xf0] }
  0x49   :  { %v1619_v14 = vor.u32 %v1862_v12, %v1616_v13  ;;  %v1804_v52 = vld [vmem:[#allocation8 + $0xa0] sm:$0xf0]  ;;  %v1467_v56 = vor.u32 %v1825_v48, %v1466_v47  ;;  %v1454_v59 = vld [vmem:[#allocation8 + $0x128] sm:$0xf]  ;;  %v1822_v60 = vld [vmem:[#allocation8 + $0x130] sm:$0xf0] }
  0x4a   :  { %929 = vmatpush.bf16.msra.mxu1 %v1463_v8  ;;  %954 = vmatpush.bf16.msrb.mxu3 %v1667_v51  ;;  %v1643_v8 = vor.u32 %v1868_v5, %v1640_v6  ;;  %v1382_v51 = vld [vmem:[#allocation8 + $0x98] sm:$0xf]  ;;  %v1852_v55 = vld [vmem:[#allocation8 + $0x220] sm:$0xf0]  ;;  %v1801_v0 = vld [vmem:[#allocation8 + $0x88] sm:$0xf0] }
  0x4b   :  { %942 = vmatpush.bf16.msra.mxu2 %v1559_v16  ;;  %v1604_v16 = vld [vmem:[#allocation8 + $0x264] sm:$0xf0]  ;;  %v1562_v1 = vld [vmem:[#allocation8 + $0x200] sm:$0xf]  ;;  %v1849_v2 = vld [vmem:[#allocation8 + $0x208] sm:$0xf0] }
  0x4c   :  { %917 = vmatpush.bf16.msrb.mxu0 %v1355_v23  ;;  %v111_v23 = vperm.slane %v2150_v18, 1  ;;  %v1442_v5 = vld [vmem:[#allocation8 + $0x110] sm:$0xf]  ;;  %v1819_v6 = vld [vmem:[#allocation8 + $0x118] sm:$0xf0]  ;;  %s1268_s11 = sshll.u32 %s2192_s7, 4  ;;  %s1269_s11 = int_to_ptr.hbm [resolvable:$true] %s1268_s11 }
  0x4d   :  { %v1358_v9 = vld [vmem:[#allocation8 + $0x68] sm:$0xf]  ;;  %v1798_v10 = vld [vmem:[#allocation8 + $0x70] sm:$0xf0]  ;;  %v1443_v13 = vor.u32 %v1819_v6, %v1442_v5  ;;  %v1682_v27 = vld [vmem:[#allocation8 + $0x2f0] sm:$0xf] }
  0x4e   :  { %930 = vmatpush.bf16.msra.mxu1 %v1451_v17  ;;  %955 = vmatpush.bf16.msrb.mxu3 %v1655_v63  ;;  %v1607_v17 = vor.u32 %v1859_v15, %v1604_v16  ;;  %v1370_v63 = vld [vmem:[#allocation8 + $0x80] sm:$0xf]  ;;  %v1846_v12 = vld [vmem:[#allocation8 + $0x1f0] sm:$0xf0]  ;;  %v1359_v15 = vor.u32 %v1798_v10, %v1358_v9  ;;  %v1430_v16 = vld [vmem:[#allocation8 + $0xf8] sm:$0xf] }
  0x4f   :  { %943 = vmatpush.bf16.msra.mxu2 %v1547_v24  ;;  %v1371_v4 = vor.u32 %v1801_v0, %v1370_v63  ;;  %v1322_v47 = vld [vmem:[#allocation8 + $0x20] sm:$0xf]  ;;  %v1834_v63 = vld [vmem:[#allocation8 + $0x190] sm:$0xf0]  ;;  %v1646_v0 = vld [vmem:[#allocation8 + $0x2a8] sm:$0xf] }
  0x50   :  { %918 = vmatpush.bf16.msrb.mxu0 %v1343_v22  ;;  %v1828_v22 = vld [vmem:[#allocation8 + $0x160] sm:$0xf0]  ;;  %v1634_v5 = vld [vmem:[#allocation8 + $0x290] sm:$0xf]  ;;  %v1867_v6 = vld [vmem:[#allocation8 + $0x298] sm:$0xf0] }
  0x51   :  { %v1479_v43 = vor.u32 %v1828_v22, %v1478_v34  ;;  %v1334_v22 = vld [vmem:[#allocation8 + $0x38] sm:$0xf]  ;;  %v1864_v9 = vld [vmem:[#allocation8 + $0x280] sm:$0xf0] }
  0x52   :  { %931 = vmatpush.bf16.msra.mxu1 %v1439_v25  ;;  %956 = vmatpush.bf16.msrb.mxu3 %v1643_v8  ;;  %v1563_v8 = vor.u32 %v1849_v2, %v1562_v1  ;;  %v1870_v1 = vld [vmem:[#allocation8 + $0x2b0] sm:$0xf0] }
  0x53   :  { %944 = vmatpush.bf16.msra.mxu2 %v1535_v38  ;;  %v1807_v38 = vld [vmem:[#allocation8 + $0xb8] sm:$0xf0] }
  0x54   :  { %919 = vmatpush.bf16.msrb.mxu0 %v1331_v46  ;;  %v1395_v46 = vor.u32 %v1807_v38, %v1394_v37  ;;  %v1526_v37 = vld [vmem:[#allocation8 + $0x1b8] sm:$0xf]  ;;  %v1840_v38 = vld [vmem:[#allocation8 + $0x1c0] sm:$0xf0] }
  0x56   :  { %932 = vmatpush.bf16.msra.mxu1 %v1427_v28  ;;  %957 = vmatpush.bf16.msrb.mxu3 %v1631_v11  ;;  %v110_v28 = vperm.slane %v2150_v18, 0  ;;  %v1550_v11 = vld [vmem:[#allocation8 + $0x1e8] sm:$0xf] }
  0x57   :  { %945 = vmatpush.bf16.msra.mxu2 %v1523_v50  ;;  %v1587_v50 = vor.u32 %v1855_v41, %v1586_v40  ;;  %v1551_v20 = vor.u32 %v1846_v12, %v1550_v11  ;;  %v1670_v40 = vld [vmem:[#allocation8 + $0x2d8] sm:$0xf]  ;;  %v1876_v41 = vld [vmem:[#allocation8 + $0x2e0] sm:$0xf0]  ;;  %v1610_v11 = vld [vmem:[#allocation8 + $0x260] sm:$0xf] }
  0x58   :  { %920 = vmatpush.bf16.msrb.mxu0 %v1319_v58  ;;  %v1383_v58 = vor.u32 %v1804_v52, %v1382_v51  ;;  %v1671_v48 = vor.u32 %v1876_v41, %v1670_v40  ;;  %v1514_v51 = vld [vmem:[#allocation8 + $0x1a0] sm:$0xf]  ;;  %v1837_v52 = vld [vmem:[#allocation8 + $0x1a8] sm:$0xf0] }
  0x59   :  { %v1861_v12 = vld [vmem:[#allocation8 + $0x268] sm:$0xf0]  ;;  %v1900_v40 = vld [vmem:[#allocation10 + $0xa0] sm:$0xff] }
  0x5a   :  { %933 = vmatpush.bf16.msra.mxu1 %v1415_v42  ;;  %958 = vmatpush.bf16.msrb.mxu3 %v1619_v14 }
  0x5b   :  { %946 = vmatpush.bf16.msra.mxu2 %v1511_v62 }
  0x5c   :  { %921 = vmatpush.bf16.msrb.mxu0 %v1307_v3  ;;  %v1455_v3 = vor.u32 %v1822_v60, %v1454_v59  ;;  %v1310_v59 = vld [vmem:[#allocation8 + $0x8] sm:$0xf] }
  0x5e   :  { %934 = vmatpush.bf16.msra.mxu1 %v1403_v54  ;;  %959 = vmatpush.bf16.msrb.mxu3 %v1607_v17  ;;  %v1574_v54 = vld [vmem:[#allocation8 + $0x218] sm:$0xf]  ;;  %v1816_v17 = vld [vmem:[#allocation8 + $0x100] sm:$0xf0] }
  0x5f   :  { %947 = vmatpush.bf16.msra.mxu2 %v1499_v7  ;;  %v1575_v61 = vor.u32 %v1852_v55, %v1574_v54  ;;  %v113_v7 = vperm.slane %v2150_v18, 3  ;;  %v1538_v18 = vld [vmem:[#allocation8 + $0x1d0] sm:$0xf]  ;;  %v1431_v26 = vor.u32 %v1816_v17, %v1430_v16  ;;  %v1658_v55 = vld [vmem:[#allocation8 + $0x2c0] sm:$0xf]  ;;  %v1887_v16 = vld [vmem:[#allocation10 + $0x38] sm:$0xff] }
  0x60   :  { %v1886_v17 = vld [vmem:[#allocation10 + $0x30] sm:$0xff] }
  0x62   :  { %960 = vmatpush.bf16.msrb.mxu3 %v1595_v21  ;;  %v1346_v21 = vld [vmem:[#allocation8 + $0x50] sm:$0xf] }
  0x9e   :  { %v176_v24 = vpop.f32.mrf.mxu1 }
  0x9f   :  { %v177_v25 = vadd.f32 %v176_v24, %v111_v23  ;;  %v1795_v23 = vld [vmem:[#allocation8 + $0x58] sm:$0xf0] }
  0xa0   :  { %v1843_v24 = vld [vmem:[#allocation8 + $0x1d8] sm:$0xf0] }
  0xa1   :  { %v207_v29 = vmax.f32 %v177_v25, 0.0  ;;  %v1539_v34 = vor.u32 %v1843_v24, %v1538_v18  ;;  %v1881_v18 = vld [vmem:[#allocation10 + $0x8] sm:$0xff] }
  0xa2   :  { %v1893_v24 = vld [vmem:[#allocation10 + $0x68] sm:$0xff] }
  0xa3   :  { %v2155_v32 = vpack.c.bf16 %v207_v29, %v207_v29  ;;  %v163_v33 = vpop.f32.mrf.mxu3  ;;  %v1418_v29 = vld [vmem:[#allocation8 + $0xe0] sm:$0xf] }
  0xa4   :  { %v164_v35 = vadd.f32 %v163_v33, %v110_v28  ;;  %v1879_v28 = vld [vmem:[#allocation8 + $0x2f8] sm:$0xf0]  ;;  %v1347_v33 = vor.u32 %v1795_v23, %v1346_v21  ;;  %v1882_v21 = vld [vmem:[#allocation10 + $0x10] sm:$0xff] }
  0xa5   :  { %v189_v36 = vpop.f32.mrf.mxu2  ;;  %883 = vmatmul.bf16.vlgmr.msrb.gmra.mxu1 %v2155_v32  ;;  %v1894_v23 = vld [vmem:[#allocation10 + $0x70] sm:$0xff] }
  0xa6   :  { %v190_v39 = vadd.f32 %v189_v36, %v112_v30  ;;  %v206_v42 = vmax.f32 %v164_v35, 0.0  ;;  %979 = vmatpush.bf16.msrb.mxu1 %v1491_v31  ;;  %v178_v44 = vpop.f32.mrf.mxu1  ;;  %v1813_v30 = vld [vmem:[#allocation8 + $0xe8] sm:$0xf0]  ;;  %v1683_v35 = vor.u32 %v1879_v28, %v1682_v27  ;;  %v1792_v36 = vld [vmem:[#allocation8 + $0x40] sm:$0xf0]  ;;  %v1891_v28 = vld [vmem:[#allocation10 + $0x58] sm:$0xff] }
  0xa7   :  { %v1810_v44 = vld [vmem:[#allocation8 + $0xd0] sm:$0xf0] }
  0xa8   :  { %v208_v45 = vmax.f32 %v190_v39, 0.0  ;;  %v2158_v49 = vpack.c.bf16 %v206_v42, %v206_v42  ;;  %v1419_v39 = vor.u32 %v1813_v30, %v1418_v29  ;;  %v1903_v29 = vld [vmem:[#allocation10 + $0xb8] sm:$0xff] }
  0xaa   :  { %v2160_v53 = vpack.c.bf16 %v208_v45, %v208_v45  ;;  %980 = vmatpush.bf16.msrb.mxu1 %v1479_v43  ;;  %870 = vmatmul.bf16.vlgmr.msra.gmra.mxu0 %v2158_v49  ;;  %v1406_v43 = vld [vmem:[#allocation8 + $0xc8] sm:$0xf]  ;;  %v1335_v45 = vor.u32 %v1792_v36, %v1334_v22 }
  0xab   :  { %v165_v57 = vpop.f32.mrf.mxu3  ;;  %966 = vmatpush.bf16.msra.mxu0 %v1395_v46  ;;  %v1527_v46 = vor.u32 %v1840_v38, %v1526_v37  ;;  %v1407_v54 = vor.u32 %v1810_v44, %v1406_v43  ;;  %v1889_v22 = vld [vmem:[#allocation10 + $0x48] sm:$0xff]  ;;  %v342_v37 = vld [vmem:[%s2189_s4] sm:$0x7]  ;;  %v1899_v43 = vld [vmem:[#allocation10 + $0x98] sm:$0xff] }
  0xac   :  { %896 = vmatmul.bf16.vlgmr.msrb.gmra.mxu2 %v2160_v53  ;;  %v344_v41 = vperm.slane %v342_v37, 0 }
  0xad   :  { %992 = vmatpush.bf16.msrb.mxu2 %v1587_v50  ;;  %v191_v62 = vpop.f32.mrf.mxu2  ;;  %v1789_v50 = vld [vmem:[#allocation8 + $0x28] sm:$0xf0] }
  0xae   :  { %981 = vmatpush.bf16.msrb.mxu1 %v1467_v56  ;;  %v1873_v56 = vld [vmem:[#allocation8 + $0x2c8] sm:$0xf0]  ;;  %v1323_v57 = vor.u32 %v1789_v50, %v1322_v47  ;;  %v1502_v62 = vld [vmem:[#allocation8 + $0x188] sm:$0xf] }
  0xaf   :  { %967 = vmatpush.bf16.msra.mxu0 %v1383_v58  ;;  %v1515_v58 = vor.u32 %v1837_v52, %v1514_v51  ;;  %v1659_v60 = vor.u32 %v1873_v56, %v1658_v55 }
  0xb1   :  { %993 = vmatpush.bf16.msrb.mxu2 %v1575_v61  ;;  %v1786_v61 = vld [vmem:[#allocation8 + $0x10] sm:$0xf0] }
  0xb2   :  { %982 = vmatpush.bf16.msrb.mxu1 %v1455_v3  ;;  %v1311_v2 = vor.u32 %v1786_v61, %v1310_v59  ;;  %v1503_v3 = vor.u32 %v1834_v63, %v1502_v62  ;;  %v1896_v59 = vld [vmem:[#allocation10 + $0x80] sm:$0xff] }
  0xb3   :  { %v202_v14 = vpop.f32.mrf.mxu3  ;;  %968 = vmatpush.bf16.msra.mxu0 %v1371_v4  ;;  %v1647_v4 = vor.u32 %v1870_v1, %v1646_v0 }
  0xb4   :  { %v203_v19 = vadd.f32 %v202_v14, %v113_v7  ;;  %v1635_v7 = vor.u32 %v1867_v6, %v1634_v5  ;;  %v1858_v14 = vld [vmem:[#allocation8 + $0x250] sm:$0xf0] }
  0xb5   :  { %994 = vmatpush.bf16.msrb.mxu2 %v1563_v8  ;;  %935 = vmatmul.bf16.vlgmr.msra.gmra.mxu1 %v2155_v32  ;;  %v1622_v8 = vld [vmem:[#allocation8 + $0x278] sm:$0xf] }
  0xb6   :  { %v209_v25 = vmax.f32 %v203_v19, 0.0  ;;  %983 = vmatpush.bf16.msrb.mxu1 %v1443_v13  ;;  %v1623_v10 = vor.u32 %v1864_v9, %v1622_v8  ;;  %v1598_v13 = vld [vmem:[#allocation8 + $0x248] sm:$0xf]  ;;  %v1883_v19 = vld [vmem:[#allocation10 + $0x18] sm:$0xff] }
  0xb7   :  { %969 = vmatpush.bf16.msra.mxu0 %v1359_v15  ;;  %v1599_v15 = vor.u32 %v1858_v14, %v1598_v13 }
  0xb8   :  { %v2166_v31 = vpack.c.bf16 %v209_v25, %v209_v25  ;;  %v1880_v25 = vld [vmem:[#allocation10] sm:$0xff] }
  0xb9   :  { %995 = vmatpush.bf16.msrb.mxu2 %v1551_v20  ;;  %v1895_v20 = vld [vmem:[#allocation10 + $0x78] sm:$0xff] }
  0xba   :  { %984 = vmatpush.bf16.msrb.mxu1 %v1431_v26  ;;  %909 = vmatmul.bf16.vlgmr.msra.gmra.mxu3 %v2166_v31  ;;  %v1892_v26 = vld [vmem:[#allocation10 + $0x60] sm:$0xff] }
  0xbb   :  { %922 = vmatmul.bf16.vlgmr.msrb.gmra.mxu0 %v2158_v49  ;;  %v204_v42 = vpop.f32.mrf.mxu3  ;;  %1005 = vmatpush.bf16.msra.mxu3 %v1683_v35  ;;  %v1901_v35 = vld [vmem:[#allocation10 + $0xa8] sm:$0xff] }
  0xbc   :  { %948 = vmatmul.bf16.vlgmr.msra.gmra.mxu2 %v2160_v53  ;;  %970 = vmatpush.bf16.msra.mxu0 %v1347_v33  ;;  %v1902_v33 = vld [vmem:[#allocation10 + $0xb0] sm:$0xff] }
  0xbd   :  { %996 = vmatpush.bf16.msrb.mxu2 %v1539_v34 }
  0xbe   :  { %985 = vmatpush.bf16.msrb.mxu1 %v1419_v39  ;;  %v1888_v39 = vld [vmem:[#allocation10 + $0x40] sm:$0xff] }
  0xbf   :  { %1006 = vmatpush.bf16.msra.mxu3 %v1671_v48 }
  0xc0   :  { %971 = vmatpush.bf16.msra.mxu0 %v1335_v45 }
  0xc1   :  { %997 = vmatpush.bf16.msrb.mxu2 %v1527_v46  ;;  %v1898_v46 = vld [vmem:[#allocation10 + $0x90] sm:$0xff] }
  0xc2   :  { %986 = vmatpush.bf16.msrb.mxu1 %v1407_v54  ;;  %v1897_v54 = vld [vmem:[#allocation10 + $0x88] sm:$0xff] }
  0xc3   :  { %1007 = vmatpush.bf16.msra.mxu3 %v1659_v60  ;;  %v345_v60 = vperm.slane %v342_v37, 1 }
  0xc4   :  { %972 = vmatpush.bf16.msra.mxu0 %v1323_v57 }
  0xc5   :  { %998 = vmatpush.bf16.msrb.mxu2 %v1515_v58  ;;  %987 = vmatmul.bf16.vlgmr.msrb.gmra.mxu1 %v2155_v32  ;;  %v1611_v32 = vor.u32 %v1861_v12, %v1610_v11  ;;  %v346_v12 = vperm.slane %v342_v37, 2 }
  0xc6   :  { %1233 = vmatpush.bf16.msra.mxu1 %v1895_v20 }
  0xc7   :  { %1008 = vmatpush.bf16.msra.mxu3 %v1647_v4 }
  0xc8   :  { %973 = vmatpush.bf16.msra.mxu0 %v1311_v2 }
  0xc9   :  { %999 = vmatpush.bf16.msrb.mxu2 %v1503_v3 }
  0xca   :  { %961 = vmatmul.bf16.vlgmr.msrb.gmra.mxu3 %v2166_v31  ;;  %1234 = vmatpush.bf16.msra.mxu1 %v1894_v23 }
  0xcb   :  { %974 = vmatmul.bf16.vlgmr.msra.gmra.mxu0 %v2158_v49  ;;  %1009 = vmatpush.bf16.msra.mxu3 %v1635_v7  ;;  %v1885_v49 = vld [vmem:[#allocation10 + $0x28] sm:$0xff] }
  0xcc   :  { %1000 = vmatmul.bf16.vlgmr.msrb.gmra.mxu2 %v2160_v53  ;;  %1220 = vmatpush.bf16.msrb.mxu0 %v1887_v16  ;;  %v1884_v53 = vld [vmem:[#allocation10 + $0x20] sm:$0xff] }
  0xcd   :  { %1246 = vmatpush.bf16.msra.mxu2 %v1903_v29 }
  0xce   :  { %1235 = vmatpush.bf16.msra.mxu1 %v1893_v24 }
  0xcf   :  { %1010 = vmatpush.bf16.msra.mxu3 %v1623_v10 }
  0xd0   :  { %1221 = vmatpush.bf16.msrb.mxu0 %v1886_v17 }
  0xd1   :  { %1247 = vmatpush.bf16.msra.mxu2 %v1902_v33 }
  0xd2   :  { %1236 = vmatpush.bf16.msra.mxu1 %v1892_v26 }
  0xd3   :  { %1011 = vmatpush.bf16.msra.mxu3 %v1611_v32 }
  0xd4   :  { %1222 = vmatpush.bf16.msrb.mxu0 %v1885_v49 }
  0xd5   :  { %1248 = vmatpush.bf16.msra.mxu2 %v1901_v35 }
  0xd6   :  { %1237 = vmatpush.bf16.msra.mxu1 %v1891_v28 }
  0xd7   :  { %1012 = vmatpush.bf16.msra.mxu3 %v1599_v15 }
  0xd8   :  { %1223 = vmatpush.bf16.msrb.mxu0 %v1884_v53 }
  0xd9   :  { %1249 = vmatpush.bf16.msra.mxu2 %v1900_v40 }
  0xda   :  { %1013 = vmatmul.bf16.vlgmr.msra.gmra.mxu3 %v2166_v31  ;;  %v1890_v31 = vld [vmem:[#allocation10 + $0x50] sm:$0xff] }
  0xdb   :  { %1238 = vmatpush.bf16.msra.mxu1 %v1890_v31 }
  0xdc   :  { %1224 = vmatpush.bf16.msrb.mxu0 %v1883_v19 }
  0xdd   :  { %1250 = vmatpush.bf16.msra.mxu2 %v1899_v43 }
  0xdf   :  { %1239 = vmatpush.bf16.msra.mxu1 %v1889_v22 }
  0xe0   :  { %1225 = vmatpush.bf16.msrb.mxu0 %v1882_v21 }
  0xe1   :  { %1251 = vmatpush.bf16.msra.mxu2 %v1898_v46 }
  0xe3   :  { %1240 = vmatpush.bf16.msra.mxu1 %v1888_v39 }
  0xe4   :  { %1226 = vmatpush.bf16.msrb.mxu0 %v1881_v18 }
  0xe5   :  { %1252 = vmatpush.bf16.msra.mxu2 %v1897_v54 }
  0xe8   :  { %1227 = vmatpush.bf16.msrb.mxu0 %v1880_v25  ;;  %v1917_v25 = vld [vmem:[%s2191_s6] ss:$0 sm:$0xff] }
  0xe9   :  { %1253 = vmatpush.bf16.msra.mxu2 %v1896_v59 }
 0x122   :  { %v884_v27 = vpop.f32.mrf.mxu1 }
 0x127   :  { %v871_v30 = vpop.f32.mrf.mxu0 }
 0x128   :  { %v872_v44 = vadd.f32 %v871_v30, %v344_v41 }
 0x12a   :  { %v886_v34 = vpop.f32.mrf.mxu1  ;;  %v885_v48 = vadd.f32 %v884_v27, %v872_v44 }
 0x12f   :  { %v897_v36 = vpop.f32.mrf.mxu2  ;;  %v873_v38 = vpop.f32.mrf.mxu0 }
 0x130   :  { %v898_v51 = vadd.f32 %v897_v36, %v885_v48 }
 0x132   :  { %v936_v42 = vpop.f32.mrf.mxu1 }
 0x137   :  { %v899_v45 = vpop.f32.mrf.mxu2 }
 0x138   :  { %v923_v47 = vpop.f32.mrf.mxu0 }
 0x139   :  { %v924_v0 = vadd.f32 %v923_v47, %v345_v60 }
 0x13a   :  { %v938_v50 = vpop.f32.mrf.mxu1 }
 0x13b   :  { %v937_v3 = vadd.f32 %v936_v42, %v924_v0 }
 0x13d   :  { %v910_v52 = vpop.f32.mrf.mxu3 }
 0x13e   :  { %v911_v55 = vadd.f32 %v910_v52, %v898_v51 }
 0x13f   :  { %v949_v56 = vpop.f32.mrf.mxu2 }
 0x140   :  { %v1018_v57 = vmax.f32 %v911_v55, 0.0  ;;  %v925_v58 = vpop.f32.mrf.mxu0  ;;  %v950_v5 = vadd.f32 %v949_v56, %v937_v3 }
 0x142   :  { %v1021_v61 = vpack.c.bf16 %v1018_v57, %v1018_v57  ;;  %v988_v62 = vpop.f32.mrf.mxu1 }
 0x144   :  { %1228 = vmatmul.bf16.vlgmr.msrb.gmra.mxu0 %v1021_v61 }
 0x145   :  { %v912_v63 = vpop.f32.mrf.mxu3 }
 0x147   :  { %v951_v1 = vpop.f32.mrf.mxu2 }
 0x148   :  { %v975_v2 = vpop.f32.mrf.mxu0 }
 0x149   :  { %v976_v14 = vadd.f32 %v975_v2, %v346_v12 }
 0x14a   :  { %v990_v4 = vpop.f32.mrf.mxu1 }
 0x14b   :  { %v989_v15 = vadd.f32 %v988_v62, %v976_v14 }
 0x14d   :  { %v962_v6 = vpop.f32.mrf.mxu3 }
 0x14e   :  { %v963_v7 = vadd.f32 %v962_v6, %v950_v5 }
 0x14f   :  { %v1001_v8 = vpop.f32.mrf.mxu2 }
 0x150   :  { %v1019_v9 = vmax.f32 %v963_v7, 0.0  ;;  %v977_v10 = vpop.f32.mrf.mxu0  ;;  %v1002_v16 = vadd.f32 %v1001_v8, %v989_v15 }
 0x152   :  { %v1022_v11 = vpack.c.bf16 %v1019_v9, %v1019_v9 }
 0x154   :  { %1241 = vmatmul.bf16.vlgmr.msra.gmra.mxu1 %v1022_v11 }
 0x155   :  { %v964_v32 = vpop.f32.mrf.mxu3 }
 0x157   :  { %v1003_v13 = vpop.f32.mrf.mxu2 }
 0x15d   :  { %v1014_v17 = vpop.f32.mrf.mxu3 }
 0x15e   :  { %v1015_v49 = vadd.f32 %v1014_v17, %v1002_v16 }
 0x160   :  { %v1020_v53 = vmax.f32 %v1015_v49, 0.0 }
 0x162   :  { %v1023_v19 = vpack.c.bf16 %v1020_v53, %v1020_v53 }
 0x164   :  { %1254 = vmatmul.bf16.vlgmr.msra.gmra.mxu2 %v1023_v19 }
 0x165   :  { %v1016_v20 = vpop.f32.mrf.mxu3 }
 0x1c1   :  { %v1229_v21 = vpop.f32.mrf.mxu0 }
 0x1c2   :  { %v1230_v26 = vadd.f32 %v1917_v25, %v1229_v21 }
 0x1c9   :  { %v1231_v23 = vpop.f32.mrf.mxu0 }
 0x1d1   :  { %v1242_v18 = vpop.f32.mrf.mxu1 }
 0x1d2   :  { %v1243_v27 = vadd.f32 %v1242_v18, %v1230_v26 }
 0x1d9   :  { %v1244_v24 = vpop.f32.mrf.mxu1 }
 0x1e7   :  { %v1255_v28 = vpop.f32.mrf.mxu2 }
 0x1e8   :  { %v1256_v29 = vadd.f32 %v1255_v28, %v1243_v27 }
 0x1ea   :  { %1918 = vtanh.f32 %v1256_v29 }
 0x1ef   :  { %v1257_v30 = vpop.f32.mrf.mxu2 }
 0x1f0   :  { %v1919_v31 = vpop.eup %1918 }
 0x1f1   :  { %1260 = vst [vmem:[#allocation11] sm:$0xff] %v1919_v31 }
 0x1f2   :  { %1271 = dma.vmem_to_hbm [thread:$0]  %s1267_s8, 128, %s1269_s11, [#allocation4]  }
 0x1f3   :  { %2070 = dma.done.wait [#allocation4], 128  }
 0x1f4   :  { %2071 = vsyncadd [#allocation4], 4294967168 }
 0x1f5   :  { %1276 = vsyncpa [#allocation3], 1 }
 0x1f6   :  { %1277 = vsyncpa [#allocation6], 1 }
 0x1f7   :  { %1278 = vsyncpa [#allocation9], 1 }
 0x1f8   :  { %1279 = vsyncpa [#allocation4], 1 }

</bundles_post_ra>
